<compile_context>
chip_gen: v7x
topology: tpu7x:2x2x1
jax: 0.10.0
libtpu: 0.0.40
codegen_flags: <defaults>
</compile_context>

<pallas_src>
import functools
import math

import jax
import jax.numpy as jnp
from jax.experimental import pallas as pl
from jax.experimental.pallas import tpu as pltpu


def _round_up(x: int, m: int) -> int:
    return (x + m - 1) // m * m


def _gelu(h, approximate):
    if approximate:
        return jax.nn.gelu(h, approximate=True)      # tanh -> EUP slot
    return 0.5 * h * (1.0 + jax.lax.erf(h * (1.0 / math.sqrt(2.0))))


def _resident_spec(shape):
    """Grid-invariant operand: constant index_map, single pipeline buffer."""
    index_map = lambda *_: (0,) * len(shape)
    try:
        return pl.BlockSpec(shape, index_map, pipeline_mode=pl.Buffered(1))
    except TypeError:
        # Older jax without pipeline_mode on BlockSpec.
        return pl.BlockSpec(shape, index_map)


def _hw_budget():
    """(vmem_limit_bytes, default token tile) tuned per TPU generation."""
    try:
        cap = int(pltpu.get_tpu_info().vmem_capacity_bytes)
    except Exception:
        cap = 0
    if cap <= 0:
        return 48 * 1024 * 1024, 256                  # safe everywhere
    limit = (cap * 3) // 4                            # ~75% of physical VMEM
    tm = 512 if cap >= 96 * 1024 * 1024 else 256      # big tiles on 128 MiB parts
    return limit, tm


def _pad_cast_2d(a, rows, cols, dtype):
    r, c = a.shape
    if r != rows or c != cols:
        a = jnp.pad(a, ((0, rows - r), (0, cols - c)))
    return a.astype(dtype)


# ---------------------------------------------------------------------------
# Kernels
# ---------------------------------------------------------------------------

def _mlp_kernel_resident(x_ref, w1_ref, b1_ref, w2_ref, b2_ref, o_ref, *,
                         approximate):
    # x_ref: (tm, Ep) bf16   w1_ref: (Ep, Hp) bf16   b1_ref: (1, Hp) f32
    # w2_ref: (Hp, Ep) bf16  b2_ref: (1, Ep) f32     o_ref: (tm, Ep)
    h = jnp.dot(x_ref[...], w1_ref[...], preferred_element_type=jnp.float32)
    h = _gelu(h + b1_ref[...], approximate)
    y = jnp.dot(h.astype(jnp.bfloat16), w2_ref[...],
                preferred_element_type=jnp.float32)
    o_ref[...] = (y + b2_ref[...]).astype(o_ref.dtype)


def _mlp_kernel_hsplit(x_ref, w1_ref, b1_ref, w2_ref, b2_ref, o_ref, acc_ref, *,
                       approximate):
    # Grid = (token tiles, hidden tiles); hidden axis is the reduction.
    # x_ref: (tm, Ep) bf16   w1_ref: (Ep, tH) bf16   b1_ref: (1, tH) f32
    # w2_ref: (tH, Ep) bf16  b2_ref: (1, Ep) f32     acc_ref: (tm, Ep) f32
    hi = pl.program_id(1)

    @pl.when(hi == 0)
    def _():
        acc_ref[...] = jnp.zeros_like(acc_ref)

    h = jnp.dot(x_ref[...], w1_ref[...], preferred_element_type=jnp.float32)
    h = _gelu(h + b1_ref[...], approximate)
    acc_ref[...] += jnp.dot(h.astype(jnp.bfloat16), w2_ref[...],
                            preferred_element_type=jnp.float32)

    @pl.when(hi == pl.num_programs(1) - 1)
    def _():
        o_ref[...] = (acc_ref[...] + b2_ref[...]).astype(o_ref.dtype)


# ---------------------------------------------------------------------------
# Wrapper
# ---------------------------------------------------------------------------

def mlp_forward(x, w1, b1, w2, b2, *, tm=None, th=512, out_dtype=None,
                approximate_gelu=False, h_split=None):
    """x: (B, S, E), w1: (E, H), b1: (H,), w2: (H, E), b2: (E,).

    Matmuls run in bf16 on the MXU with f32 accumulation; bias + GELU in f32.
    h_split=None picks the H-reduction path automatically when resident
    weights + the f32 hidden intermediate would overflow the VMEM budget.
    """
    B, S, E = x.shape
    H = w1.shape[1]
    T = B * S
    out_dtype = jnp.dtype(out_dtype) if out_dtype is not None else x.dtype
    out_itemsize = jnp.dtype(out_dtype).itemsize

    vmem_limit, tm_default = _hw_budget()
    tm_req = tm if tm is not None else tm_default

    Ep = _round_up(E, 128)
    Hp = _round_up(H, 128)

    # Token tile: clamp to the problem; keep >= 2 grid steps when there is
    # enough work so both v7x TensorCores get a share of the "parallel" axis.
    tm_eff = min(tm_req, _round_up(T, 8))
    if T > 8 and pl.cdiv(T, tm_eff) < 2:
        tm_eff = max(8, _round_up(pl.cdiv(T, 2), 8))
    num_t = pl.cdiv(T, tm_eff)

    # Decide resident vs H-split from a per-TC VMEM estimate.
    resident_bytes = (
        2 * Ep * Hp * 2                 # W1 + W2 resident, bf16, single buffer
        + (Ep + Hp) * 4                 # biases
        + 2 * tm_eff * Ep * 2           # x tiles (double-buffered, bf16)
        + 2 * tm_eff * Ep * out_itemsize  # out tiles (double-buffered)
        + tm_eff * Hp * 6               # f32 hidden intermediate + bf16 copy
        + tm_eff * Ep * 4)              # f32 y before cast / headroom
    if h_split is None:
        h_split = resident_bytes > (vmem_limit * 7) // 10

    # Wrapper-side prep: fold the bf16 cast and (only if needed) the lane pad
    # of x into a single pass; skip entirely when E is a 128-multiple and x is
    # already bf16.
    x2 = x.reshape(T, E)
    if Ep != E:
        x2 = jnp.pad(x2.astype(jnp.bfloat16), ((0, 0), (0, Ep - E)))
    else:
        x2 = x2.astype(jnp.bfloat16)

    if h_split:
        tH = min(_round_up(th, 128), Hp)
        Hp = _round_up(H, tH)           # zero-padded hidden units contribute 0

    w1p = _pad_cast_2d(w1, Ep, Hp, jnp.bfloat16)
    w2p = _pad_cast_2d(w2, Hp, Ep, jnp.bfloat16)
    b1p = _pad_cast_2d(b1.reshape(1, H), 1, Hp, jnp.float32)
    b2p = _pad_cast_2d(b2.reshape(1, E), 1, Ep, jnp.float32)

    cost = pl.CostEstimate(
        flops=4 * T * Ep * Hp,                       # two matmuls
        transcendentals=T * Hp,                      # one erf/tanh per hidden
        bytes_accessed=(x2.size * 2 + w1p.size * 2 + w2p.size * 2
                        + b1p.size * 4 + b2p.size * 4
                        + T * Ep * out_itemsize),
    )

    if not h_split:
        grid = (num_t,)
        kernel = functools.partial(_mlp_kernel_resident,
                                   approximate=approximate_gelu)
        in_specs = [
            pl.BlockSpec((tm_eff, Ep), lambda i: (i, 0)),   # x (pipelined bf16)
            _resident_spec((Ep, Hp)),                       # W1 (resident)
            _resident_spec((1, Hp)),                        # b1
            _resident_spec((Hp, Ep)),                       # W2 (resident)
            _resident_spec((1, Ep)),                        # b2
        ]
        out_specs = pl.BlockSpec((tm_eff, Ep), lambda i: (i, 0))
        scratch_shapes = []
        dims = ("parallel",)
    else:
        num_h = Hp // tH
        grid = (num_t, num_h)
        kernel = functools.partial(_mlp_kernel_hsplit,
                                   approximate=approximate_gelu)
        in_specs = [
            pl.BlockSpec((tm_eff, Ep), lambda i, h: (i, 0)),  # x
            pl.BlockSpec((Ep, tH), lambda i, h: (0, h)),      # W1 tile
            pl.BlockSpec((1, tH), lambda i, h: (0, h)),       # b1 tile
            pl.BlockSpec((tH, Ep), lambda i, h: (h, 0)),      # W2 tile
            _resident_spec((1, Ep)),                          # b2 (resident)
        ]
        out_specs = pl.BlockSpec((tm_eff, Ep), lambda i, h: (i, 0))
        scratch_shapes = [pltpu.VMEM((tm_eff, Ep), jnp.float32)]
        dims = ("parallel", "arbitrary")

    out2 = pl.pallas_call(
        kernel,
        out_shape=jax.ShapeDtypeStruct((T, Ep), out_dtype),
        grid_spec=pltpu.PrefetchScalarGridSpec(
            num_scalar_prefetch=0,
            grid=grid,
            in_specs=in_specs,
            out_specs=out_specs,
            scratch_shapes=scratch_shapes,
        ),
        compiler_params=pltpu.CompilerParams(
            dimension_semantics=dims,
            vmem_limit_bytes=vmem_limit,
        ),
        cost_estimate=cost,
    )(x2, w1p, b1p, w2p, b2p)

    if Ep != E:
        out2 = out2[:, :E]
    return out2.reshape(B, S, E)


def mlp_reference(x, w1, b1, w2, b2, matmul_dtype=jnp.float32):
    """Pure-JAX reference. matmul_dtype=bf16 mirrors the kernel's MXU math."""
    h = jnp.dot(x.astype(matmul_dtype), w1.astype(matmul_dtype),
                preferred_element_type=jnp.float32) + b1
    h = 0.5 * h * (1.0 + jax.lax.erf(h * (1.0 / math.sqrt(2.0))))
    y = jnp.dot(h.astype(matmul_dtype), w2.astype(matmul_dtype),
                preferred_element_type=jnp.float32) + b2
    return y


if __name__ == "__main__":
    # config: embed_dim=32, mlp_ratio=4, mlp_dropout=0.1 (identity in eval)
    B, S, E, R = 2, 8, 32, 4
    H = E * R

    key = jax.random.PRNGKey(0)
    kx, kw1, kb1, kw2, kb2 = jax.random.split(key, 5)

    x = jax.random.normal(kx, (B, S, E), dtype=jnp.float32)
    lim1 = 1.0 / math.sqrt(E)
    w1 = jax.random.uniform(kw1, (E, H), jnp.float32, -lim1, lim1)
    b1 = jax.random.uniform(kb1, (H,), jnp.float32, -lim1, lim1)
    lim2 = 1.0 / math.sqrt(H)
    w2 = jax.random.uniform(kw2, (H, E), jnp.float32, -lim2, lim2)
    b2 = jax.random.uniform(kb2, (E,), jnp.float32, -lim2, lim2)

    out = jax.block_until_ready(mlp_forward(x, w1, b1, w2, b2))
    assert out.shape == (B, S, E) and out.dtype == jnp.float32

    # Tight check vs a reference mirroring the bf16-MXU / f32-accumulate math.
    ref_bf16 = mlp_reference(x, w1, b1, w2, b2, jnp.bfloat16)
    assert jnp.allclose(out, ref_bf16, atol=2e-3, rtol=2e-3), \
        "mismatch vs bf16-matmul reference (resident path)"
    # Loose check vs full-f32 reference (within bf16 MXU rounding budget).
    ref_f32 = mlp_reference(x, w1, b1, w2, b2, jnp.float32)
    assert jnp.allclose(out, ref_f32, atol=5e-2, rtol=5e-2), \
        "mismatch vs f32 reference (resident path)"

    # Exercise the H-split accumulator path (used automatically when resident
    # weights + the f32 hidden intermediate exceed the VMEM budget, e.g. large
    # E/H on v7x) on a slightly larger config with a ragged token count.
    B2, S2, E2, R2 = 2, 9, 128, 4
    H2 = E2 * R2
    k2 = jax.random.split(jax.random.PRNGKey(1), 5)
    x_b = jax.random.normal(k2[0], (B2, S2, E2), dtype=jnp.float32)
    l1 = 1.0 / math.sqrt(E2)
    l2 = 1.0 / math.sqrt(H2)
    w1_b = jax.random.uniform(k2[1], (E2, H2), jnp.float32, -l1, l1)
    b1_b = jax.random.uniform(k2[2], (H2,), jnp.float32, -l1, l1)
    w2_b = jax.random.uniform(k2[3], (H2, E2), jnp.float32, -l2, l2)
    b2_b = jax.random.uniform(k2[4], (E2,), jnp.float32, -l2, l2)

    out_b = jax.block_until_ready(
        mlp_forward(x_b, w1_b, b1_b, w2_b, b2_b, h_split=True, th=128))
    ref_b = mlp_reference(x_b, w1_b, b1_b, w2_b, b2_b, jnp.bfloat16)
    assert out_b.shape == (B2, S2, E2)
    assert jnp.allclose(out_b, ref_b, atol=2e-3, rtol=2e-3), \
        "mismatch vs bf16-matmul reference (H-split path)"

    print("KERNEL_OK")
</pallas_src>

<mosaic_0001>
module attributes {stable_mosaic.version = 11 : i64} {
  func.func @_mlp_kernel_resident(%arg0: i32, %arg1: memref<8x128xbf16, #tpu.memory_space<vmem>>, %arg2: memref<128x128xbf16, #tpu.memory_space<vmem>>, %arg3: memref<1x128xf32, #tpu.memory_space<vmem>>, %arg4: memref<128x128xbf16, #tpu.memory_space<vmem>>, %arg5: memref<1x128xf32, #tpu.memory_space<vmem>>, %arg6: memref<8x128xf32, #tpu.memory_space<vmem>>) attributes {dimension_semantics = [#tpu.dimension_semantics<parallel>], iteration_bounds = array<i64: 2>, scalar_prefetch = 0 : i64, scratch_operands = 0 : i64, tpu.core_type = #tpu.core_type<tc>, window_params = [{transform_indices = @transform_0, window_bounds = array<i64: 8, 128>}, {pipeline_mode = #tpu.pipeline_mode<synchronous>, transform_indices = @transform_1, window_bounds = array<i64: 128, 128>}, {pipeline_mode = #tpu.pipeline_mode<synchronous>, transform_indices = @transform_2, window_bounds = array<i64: 1, 128>}, {pipeline_mode = #tpu.pipeline_mode<synchronous>, transform_indices = @transform_3, window_bounds = array<i64: 128, 128>}, {pipeline_mode = #tpu.pipeline_mode<synchronous>, transform_indices = @transform_4, window_bounds = array<i64: 1, 128>}, {transform_indices = @transform_5, window_bounds = array<i64: 8, 128>}]} {
    %c0 = arith.constant 0 : index
    %c0_0 = arith.constant 0 : index
    %0 = vector.load %arg1[%c0, %c0_0] : memref<8x128xbf16, #tpu.memory_space<vmem>>, vector<8x128xbf16>
    %c0_1 = arith.constant 0 : index
    %c0_2 = arith.constant 0 : index
    %1 = vector.load %arg2[%c0_1, %c0_2] : memref<128x128xbf16, #tpu.memory_space<vmem>>, vector<128x128xbf16>
    %cst = arith.constant dense<0.000000e+00> : vector<8x128xf32>
    %2 = tpu.matmul %0, %1, %cst {dimension_numbers = #tpu.dot_dimension_numbers<[1], [0], [0], [1], [0, 0, 1, 1], [], []>} : vector<8x128xbf16>, vector<128x128xbf16>, vector<8x128xf32> -> vector<8x128xf32>
    %c0_3 = arith.constant 0 : index
    %c0_4 = arith.constant 0 : index
    %3 = vector.load %arg3[%c0_3, %c0_4] : memref<1x128xf32, #tpu.memory_space<vmem>>, vector<1x128xf32>
    %4 = vector.broadcast %3 : vector<1x128xf32> to vector<8x128xf32>
    %5 = arith.addf %2, %4 : vector<8x128xf32>
    %cst_5 = arith.constant 5.000000e-01 : f32
    %6 = vector.broadcast %cst_5 : f32 to vector<8x128xf32>
    %7 = arith.mulf %6, %5 : vector<8x128xf32>
    %cst_6 = arith.constant 0.707106769 : f32
    %8 = vector.broadcast %cst_6 : f32 to vector<8x128xf32>
    %9 = arith.mulf %5, %8 : vector<8x128xf32>
    %10 = math.erf %9 : vector<8x128xf32>
    %cst_7 = arith.constant 1.000000e+00 : f32
    %11 = vector.broadcast %cst_7 : f32 to vector<8x128xf32>
    %12 = arith.addf %11, %10 : vector<8x128xf32>
    %13 = arith.mulf %7, %12 : vector<8x128xf32>
    %14 = arith.truncf %13 : vector<8x128xf32> to vector<8x128xbf16>
    %c0_8 = arith.constant 0 : index
    %c0_9 = arith.constant 0 : index
    %15 = vector.load %arg4[%c0_8, %c0_9] : memref<128x128xbf16, #tpu.memory_space<vmem>>, vector<128x128xbf16>
    %cst_10 = arith.constant dense<0.000000e+00> : vector<8x128xf32>
    %16 = tpu.matmul %14, %15, %cst_10 {dimension_numbers = #tpu.dot_dimension_numbers<[1], [0], [0], [1], [0, 0, 1, 1], [], []>} : vector<8x128xbf16>, vector<128x128xbf16>, vector<8x128xf32> -> vector<8x128xf32>
    %c0_11 = arith.constant 0 : index
    %c0_12 = arith.constant 0 : index
    %17 = vector.load %arg5[%c0_11, %c0_12] : memref<1x128xf32, #tpu.memory_space<vmem>>, vector<1x128xf32>
    %18 = vector.broadcast %17 : vector<1x128xf32> to vector<8x128xf32>
    %19 = arith.addf %16, %18 : vector<8x128xf32>
    %c0_13 = arith.constant 0 : index
    %c0_14 = arith.constant 0 : index
    %20 = vector.load %arg6[%c0_13, %c0_14] : memref<8x128xf32, #tpu.memory_space<vmem>>, vector<8x128xf32>
    tpu.vector_store %arg6[%c0_13, %c0_14], %19 {strides = array<i32>} : memref<8x128xf32, #tpu.memory_space<vmem>>, vector<8x128xf32>,
    return
  }
  func.func @transform_0(%arg0: i32) -> (i32, i32) {
    %c0_i32 = arith.constant 0 : i32
    %c0_i32_0 = arith.constant 0 : i32
    return %arg0, %c0_i32 : i32, i32
  }
  func.func @transform_1(%arg0: i32) -> (i32, i32) {
    %c0_i32 = arith.constant 0 : i32
    %c0_i32_0 = arith.constant 0 : i32
    %c0_i32_1 = arith.constant 0 : i32
    return %c0_i32, %c0_i32_0 : i32, i32
  }
  func.func @transform_2(%arg0: i32) -> (i32, i32) {
    %c0_i32 = arith.constant 0 : i32
    %c0_i32_0 = arith.constant 0 : i32
    %c0_i32_1 = arith.constant 0 : i32
    return %c0_i32, %c0_i32_0 : i32, i32
  }
  func.func @transform_3(%arg0: i32) -> (i32, i32) {
    %c0_i32 = arith.constant 0 : i32
    %c0_i32_0 = arith.constant 0 : i32
    %c0_i32_1 = arith.constant 0 : i32
    return %c0_i32, %c0_i32_0 : i32, i32
  }
  func.func @transform_4(%arg0: i32) -> (i32, i32) {
    %c0_i32 = arith.constant 0 : i32
    %c0_i32_0 = arith.constant 0 : i32
    %c0_i32_1 = arith.constant 0 : i32
    return %c0_i32, %c0_i32_0 : i32, i32
  }
  func.func @transform_5(%arg0: i32) -> (i32, i32) {
    %c0_i32 = arith.constant 0 : i32
    %c0_i32_0 = arith.constant 0 : i32
    return %arg0, %c0_i32 : i32, i32
  }
}

</mosaic_0001>

<bundles_post_ra>
// kernel: tpu_custom_call.1
= control target key start
LH: loop header
LB: loop body
LE: loop exit
PB: predicated region body
PF: predicated region fallthrough
CT: control target
= control target key end

     0   :  { %10 = vsyncpa [#allocation3], 0  ;;  %s1219_s0 = inlined_call_operand.hbm [shape: bf16[16,128], index: 0, kind: input, shape index: {}]   ;;  %s1220_s1 = inlined_call_operand.hbm [shape: bf16[128,128], index: 1, kind: input, shape index: {}]   ;;  %s1221_s2 = inlined_call_operand.vmem [shape: f32[1,128], index: 2, kind: input, shape index: {}]   ;;  %s1222_s3 = inlined_call_operand.hbm [shape: bf16[128,128], index: 3, kind: input, shape index: {}]   ;;  %s1223_s4 = inlined_call_operand.vmem [shape: f32[1,128], index: 4, kind: input, shape index: {}]   ;;  %s1224_s5 = inlined_call_operand.hbm [shape: f32[16,128], index: 5, kind: output, shape index: {}]  }
   0x1   :  { %12 = vsyncpa [#allocation3 + $0x1], 0 }
   0x2   :  { %13 = vsyncpa [#allocation6], 0 }
   0x3   :  { %14 = vsyncpa [#allocation4], 0 }
   0x4   :  { %16 = vsyncpa [#allocation4 + $0x1], 0  ;;  %s980_s18 = smov 0   ;;  %s982_s19 = smov 0  }
   0x5   :  { %s984_s20 = smov 0   ;;  %s986_s21 = smov 0  }
   0x6 LB: > { %s1001_s22 = sadd.s32 4294967295, %s940_s21   ;;  %s603_s23 = sadd.s32 4294967294, %s940_s21   ;;  %s940_s21 = sphi %s986_s21, %s1244_s21   ;;  %s936_s20 = sphi %s984_s20, %s1243_s20   ;;  %s932_s19 = sphi %s982_s19, %s1242_s19   ;;  %s928_s18 = sphi %s980_s18, %s1241_s18  }
   0x7   : > { %p42_p0 = scmp.ne.s32.totalorder %s932_s19, %s928_s18  ;;  %p1225_p1 = scmp.eq.s32.totalorder %s1001_s22, 0 }
   0x8   : > { %p156_p3 = scmp.eq.s32.totalorder %s603_s23, 1  ;;  %p604_p5 = scmp.ge.s32.totalorder %s940_s21, 1 }
   0x9   : > { %p1010_p4 = por %p1225_p1, %p42_p0  ;;  %p163_p7 = scmp.lt.s32.totalorder %s940_s21, 3 }
   0xa   : > { %p1015_p6 = por %p156_p3, %p42_p0  ;;  %s942_s27 = smov [#allocation5]  }
   0xb   : > { %s1228_s24 = scalar_select %p1010_p4, 1, 0 }
   0xc   : > { %s1229_s25 = scalar_select %p1015_p6, 1, 0 }
   0xd   : > { %p1020_p8 = pnand %p604_p5, %p163_p7  ;;  %s175_s28 = sshll.u32 %s942_s27, 4  ;;  %s1024_s28 = int_to_ptr.vmem [resolvable:$true] %s175_s28 }
   0xe   : > { %s943_s30 = smov [#allocation7]   ;;  %s784_s9 = scalar_lea.hbm %s1220_s1, 1024 }
   0xf   : > { %p707_p9 = pneg %p1020_p8  ;;  %s191_s6 = sshll.u32 %s943_s30, 4  ;;  %s1035_s6 = int_to_ptr.vmem [resolvable:$true] %s191_s6 }
  0x10   : > { %p785_p12 = scmp.ne.s32.totalorder %s1220_s1, %s784_s9  ;;  %p791_p5 = scmp.lt.u32.totalorder %s784_s9, %s1220_s1 }
  0x11   : > { %p1031_p11 = pnand %p707_p9, %p1225_p1 }
  0x13   : > { %p786_p13 = pneg %p1031_p11 }
  0x15   : > { %p787_p0 = pnand %p786_p13, %p785_p12 }
  0x17   : > { %p788_p3 = pneg %p787_p0 }
  0x19   : > { %p793_p7 = pnand %p791_p5, %p788_p3 }
  0x1b   : > { %796 = shalt.err (!%p793_p7)
}
  0x1c   : > { %s797_s14 = scalar_lea.vmem %s1024_s28, 1024  ;;  %p805_p2 = scmp.lt.s32.totalorder %s1024_s28, %s1024_s28 }
  0x1d   : > { %p798_p9 = scmp.ne.s32.totalorder %s1024_s28, %s797_s14  ;;  %p806_p12 = scmp.lt.s32.totalorder %s797_s14, %s797_s14 }
  0x1f   : > { %p800_p10 = pnand %p798_p9, %p786_p13  ;;  %p807_p0 = por %p806_p12, %p805_p2 }
  0x21   : > { %p801_p1 = pneg %p800_p10 }
  0x23   : > { %p808_p6 = pnand %p807_p0, %p801_p1 }
  0x25   : > { %811 = shalt.err (!%p808_p6)
}
  0x26   : > { %s944_s15 = smov 64   ;;  %s945_s16 = smov 4  }
  0x27   : > { %710 = dma.hbm_to_vmem [thread:$0]  (!%p1031_p11), %s1220_s1, 1024, %s1024_s28, [#allocation6], %s944_s15, %s944_s15, %s945_s16  }
  0x28   : > { %s812_s7 = scalar_lea.hbm %s1222_s3, 1024 }
  0x29   : > { %p813_p2 = scmp.ne.s32.totalorder %s1222_s3, %s812_s7  ;;  %p819_p10 = scmp.lt.u32.totalorder %s812_s7, %s1222_s3 }
  0x2b   : > { %p815_p1 = pnand %p813_p2, %p786_p13 }
  0x2d   : > { %p816_p6 = pneg %p815_p1 }
  0x2f   : > { %p821_p3 = pnand %p819_p10, %p816_p6 }
  0x31   : > { %824 = shalt.err (!%p821_p3)
}
  0x32   : > { %s825_s28 = scalar_lea.vmem %s1035_s6, 1024  ;;  %p833_p12 = scmp.lt.s32.totalorder %s1035_s6, %s1035_s6 }
  0x33   : > { %p826_p5 = scmp.ne.s32.totalorder %s1035_s6, %s825_s28  ;;  %p834_p0 = scmp.lt.s32.totalorder %s825_s28, %s825_s28 }
  0x35   : > { %p828_p7 = pnand %p826_p5, %p786_p13  ;;  %p835_p2 = por %p834_p0, %p833_p12 }
  0x37   : > { %p829_p9 = pneg %p828_p7 }
  0x39   : > { %p836_p1 = pnand %p835_p2, %p829_p9 }
  0x3b   : > { %839 = shalt.err (!%p836_p1)
}
  0x3c   : > { %713 = dma.hbm_to_vmem [thread:$0]  (!%p1031_p11), %s1222_s3, 1024, %s1035_s6, [#allocation6], %s944_s15, %s944_s15, %s945_s16  }
  0x3d   : > { %s1090_s14 = sadd.s32 1, %s940_s21   ;;  %s29_s29 = sadd.s32 1, %s936_s20 }
  0x3e   : > { %s26_s17 = ssub.s32 %s940_s21, %s1090_s14  ;;  %p36_p13 = scmp.ne.s32.totalorder %s936_s20, %s932_s19 }
  0x3f   : > { %p27_p6 = scmp.eq.s32.totalorder %s26_s17, 0  ;;  %p37_p10 = scmp.eq.s32.totalorder %s940_s21, 0 }
  0x40   : > { %p1232_p3 = scmp.eq.s32.totalorder %s1001_s22, 1  ;;  %p724_p7 = scmp.lt.s32.totalorder %s940_s21, 2 }
  0x41   : > { %s1106_s27 = scalar_select %p27_p6, %s936_s20, %s29_s29  }
  0x42   : > { %p1100_p5 = por %p1232_p3, %p36_p13  ;;  %p38_p9 = por %p37_p10, %p36_p13 }
  0x43   : > { %s208_s30 = sand.u32 1, %s936_s20   ;;  %s609_s6 = sshll.u32 %s940_s21, 6 }
  0x44   : > { %s1233_s23 = scalar_select %p1100_p5, 1, 0 }
  0x45   : > { %s608_s7 = sshll.u32 %s208_s30, 2  ;;  %s1113_s8 = scalar_lea.hbm %s1219_s0, %s609_s6 }
  0x46   : > { %s212_s9 = scalar_lea.vmem [#allocation2], %s608_s7  ;;  %p1117_p11 = pnand %p724_p7, %p38_p9 }
  0x47   : > { %s219_s10 = sshll.u32 %s212_s9, 4  ;;  %s209_s28 = scalar_lea.sflag [#allocation3], %s208_s30  ;;  %s1115_s10 = int_to_ptr.vmem [resolvable:$true] %s219_s10 }
  0x48   : > { %s840_s12 = scalar_lea.hbm %s1113_s8, 64  ;;  %p842_p0 = pneg %p1117_p11 }
  0x49   : > { %p841_p12 = scmp.ne.s32.totalorder %s1113_s8, %s840_s12  ;;  %s845_s17 = scalar_lea.hbm %s1219_s0, 128 }
  0x4a   : > { %p846_p13 = scmp.lt.u32.totalorder %s1113_s8, %s1219_s0  ;;  %p847_p6 = scmp.lt.u32.totalorder %s845_s17, %s840_s12 }
  0x4b   : > { %p843_p2 = pnand %p842_p0, %p841_p12  ;;  %p849_p3 = scmp.lt.u32.totalorder %s840_s12, %s1113_s8 }
  0x4c   : > { %p848_p10 = por %p847_p6, %p846_p13 }
  0x4d   : > { %p844_p1 = pneg %p843_p2 }
  0x4e   : > { %p850_p7 = por %p849_p3, %p848_p10 }
  0x50   : > { %p851_p9 = pnand %p850_p7, %p844_p1 }
  0x52   : > { %854 = shalt.err (!%p851_p9)
}
  0x53   : > { %s855_s30 = scalar_lea.vmem %s1115_s10, 64  ;;  %s946_s15 = smov [#allocation2]  }
  0x54   : > { %p856_p12 = scmp.ne.s32.totalorder %s1115_s10, %s855_s30  ;;  %s860_s16 = sshll.u32 %s946_s15, 4  ;;  %s861_s16 = int_to_ptr.vmem [resolvable:$false] %s860_s16 }
  0x55   : > { %s862_s9 = scalar_lea.vmem %s861_s16, 128  ;;  %p863_p4 = scmp.lt.s32.totalorder %s1115_s10, %s861_s16 }
  0x56   : > { %p858_p2 = pnand %p856_p12, %p842_p0  ;;  %p864_p13 = scmp.lt.s32.totalorder %s862_s9, %s855_s30 }
  0x58   : > { %p859_p5 = pneg %p858_p2  ;;  %p865_p6 = por %p864_p13, %p863_p4 }
  0x5a   : > { %p866_p10 = pnand %p865_p6, %p859_p5 }
  0x5c   : > { %869 = shalt.err (!%p866_p10)
}
  0x5d   : > { %717 = dma.hbm_to_vmem [thread:$0]  (!%p1117_p11), %s1113_s8, 64, %s1115_s10, %s209_s28  }
  0x5e   : > { %228 = sbr.rel (%p1020_p8) target bundleno = 600 (0x258), region = 40  ;;  %s1149_s12 = sand.u32 (!%p1020_p8), 1, %s932_s19  }
  0x5f   : > { %s611_s13 = sshll.u32 (!%p1020_p8), %s1149_s12, 2  ;;  %s231_s29 = scalar_lea.sflag (!%p1020_p8), [#allocation3], %s1149_s12 }
  0x60   : > { %s1153_s17 = scalar_lea.vmem (!%p1020_p8), [#allocation2], %s611_s13  ;;  %p1235_p4 = scmp.ne.s32.totalorder (!%p1020_p8), %s1228_s24, 0 }
  0x65   : > { %915 = dma.done.wait (%p1235_p4), %s231_s29, 64  }
  0x66   : > { %917 = vsyncadd (%p1235_p4), %s231_s29, 4294967232  ;;  %p1236_p5 = scmp.eq.s32.totalorder %s1001_s22, 0 }
  0x68   : > { %919 = dma.done.wait (%p1236_p5), [#allocation6], 2048   ;;  %p1237_p8 = pmov %p1236_p5 }
  0x69   : > { %v947_v0 = vmov 0.0   ;;  %vm948_vm0 = vmmov 0   ;;  %v766_v1 = vld [vmem:[#allocation5] sm:$0xff]   ;;  %v767_v2 = vld [vmem:[#allocation5 + $0x8] sm:$0xff]   ;;  %v768_v3 = vld [vmem:[#allocation5 + $0x10] sm:$0xff]   ;;  %s614_s8 = sshll.u32 %s1149_s12, 3 }
  0x6a   : > { %921 = vsyncadd (%p1237_p8), [#allocation6], 4294965248  ;;  %655 = vmatprep.subr.bf16.mxu0 %v947_v0  ;;  %671 = vmatprep.mubr.msk.bf16.mxu0 %vm948_vm0, %v947_v0  ;;  %v774_v4 = vld [vmem:[#allocation7] sm:$0xff]   ;;  %v769_v5 = vld [vmem:[#allocation5 + $0x18] sm:$0xff]   ;;  %s634_s28 = sshll.u32 %s1001_s22, 7  ;;  %s268_s7 = scalar_lea.vmem [#allocation8], %s614_s8 }
  0x6b   : > { %675 = vmatprep.subr.bf16.mxu1 %v947_v0  ;;  %691 = vmatprep.mubr.msk.bf16.mxu1 %vm948_vm0, %v947_v0  ;;  %v775_v6 = vld [vmem:[#allocation7 + $0x8] sm:$0xff]   ;;  %v770_v7 = vld [vmem:[#allocation5 + $0x20] sm:$0xff]   ;;  %v776_v8 = vld [vmem:[#allocation7 + $0x10] sm:$0xff]   ;;  %s514_s6 = sshll.u32 %s268_s7, 4  ;;  %s1175_s16 = scalar_lea.hbm %s1224_s5, %s634_s28  ;;  %s1177_s6 = int_to_ptr.vmem [resolvable:$true] %s514_s6 }
  0x6c   : > { %656 = vmatpush3.bf16.msra.mxu0 %v766_v1  ;;  %676 = vmatpush3.bf16.msra.mxu1 %v774_v4  ;;  %v771_v9 = vld [vmem:[#allocation5 + $0x28] sm:$0xff]   ;;  %v772_v10 = vld [vmem:[#allocation5 + $0x30] sm:$0xff]   ;;  %v773_v11 = vld [vmem:[#allocation5 + $0x38] sm:$0xff]   ;;  %s501_s9 = scalar_lea.sflag [#allocation4], %s1149_s12  ;;  %s870_s22 = scalar_lea.vmem %s1177_s6, 128 }
  0x6d   : > { %657 = vmatprep.subr.bf16.mxu0 %v947_v0  ;;  %677 = vmatprep.subr.bf16.mxu1 %v947_v0  ;;  %v270_v12 = vld [vmem:[%s1153_s17] sm:$0xf]  ;;  %v778_v14 = vld [vmem:[#allocation7 + $0x20] sm:$0xff]   ;;  %v779_v15 = vld [vmem:[#allocation7 + $0x28] sm:$0xff]   ;;  %p871_p11 = scmp.ne.s32.totalorder %s1177_s6, %s870_s22  ;;  %p1238_p0 = scmp.ne.s32.totalorder %s1233_s23, 0 }
  0x6e   : > { %v777_v13 = vld [vmem:[#allocation7 + $0x18] sm:$0xff]   ;;  %v780_v16 = vld [vmem:[#allocation7 + $0x30] sm:$0xff]   ;;  %s949_s13 = smov [#allocation8]  }
  0x6f   : > { %v781_v17 = vld [vmem:[#allocation7 + $0x38] sm:$0xff]   ;;  %p872_p1 = pnand %p871_p11, %p1238_p0  ;;  %s874_s29 = sshll.u32 %s949_s13, 4  ;;  %s875_s29 = int_to_ptr.vmem [resolvable:$false] %s874_s29 }
  0x70   : > { %658 = vmatpush3.bf16.msra.mxu0 %v767_v2  ;;  %678 = vmatpush3.bf16.msra.mxu1 %v775_v6  ;;  %v615_v18 = vld [vmem:[%s1221_s2] ss:$0 sm:$0xff]  ;;  %s876_s17 = scalar_lea.vmem %s875_s29, 256  ;;  %p877_p7 = scmp.lt.s32.totalorder %s1177_s6, %s875_s29 }
  0x71   : > { %659 = vmatprep.subr.bf16.mxu0 %v947_v0  ;;  %679 = vmatprep.subr.bf16.mxu1 %v947_v0  ;;  %v624_v30 = vld [vmem:[%s1223_s4] ss:$0 sm:$0xff]  ;;  %p873_p3 = pneg %p872_p1  ;;  %p878_p9 = scmp.lt.s32.totalorder %s876_s17, %s870_s22 }
  0x73   : > { %p879_p12 = por %p878_p9, %p877_p7 }
  0x74   : > { %660 = vmatpush3.bf16.msra.mxu0 %v768_v3  ;;  %680 = vmatpush3.bf16.msra.mxu1 %v776_v8 }
  0x75   : > { %661 = vmatprep.subr.bf16.mxu0 %v947_v0  ;;  %681 = vmatprep.subr.bf16.mxu1 %v947_v0  ;;  %p880_p2 = pnand %p879_p12, %p873_p3 }
  0x78   : > { %662 = vmatpush3.bf16.msra.mxu0 %v769_v5  ;;  %682 = vmatpush3.bf16.msra.mxu1 %v777_v13 }
  0x79   : > { %663 = vmatprep.subr.bf16.mxu0 %v947_v0  ;;  %683 = vmatprep.subr.bf16.mxu1 %v947_v0 }
  0x7c   : > { %664 = vmatpush3.bf16.msra.mxu0 %v770_v7  ;;  %684 = vmatpush3.bf16.msra.mxu1 %v778_v14 }
  0x7d   : > { %665 = vmatprep.subr.bf16.mxu0 %v947_v0  ;;  %685 = vmatprep.subr.bf16.mxu1 %v947_v0 }
  0x80   : > { %666 = vmatpush3.bf16.msra.mxu0 %v771_v9  ;;  %686 = vmatpush3.bf16.msra.mxu1 %v779_v15 }
  0x81   : > { %667 = vmatprep.subr.bf16.mxu0 %v947_v0  ;;  %687 = vmatprep.subr.bf16.mxu1 %v947_v0 }
  0x84   : > { %668 = vmatpush3.bf16.msra.mxu0 %v772_v10  ;;  %688 = vmatpush3.bf16.msra.mxu1 %v780_v16 }
  0x85   : > { %669 = vmatprep.subr.bf16.mxu0 %v947_v0  ;;  %689 = vmatprep.subr.bf16.mxu1 %v947_v0 }
  0x88   : > { %670 = vmatpush3.bf16.msra.mxu0 %v773_v11  ;;  %690 = vmatpush3.bf16.msra.mxu1 %v781_v17 }
  0x8b   : > { %672 = vmatmul.mubr.bf16.vlgmr.msra.gmra.mrb[0].mxu0 %v270_v12 }
 0x15e   : > { %v376_v19 = vpop.f32.mrb[0].mxu0 }
 0x15f   : > { %v377_v20 = vadd.f32 %v615_v18, %v376_v19  ;;  %v673_v21 = vpop.f32.mrb[1].mxu0 }
 0x160   : > { %v379_v22 = vpop.f32.mrb[2].mxu0 }
 0x161   : > { %v383_v23 = vmul.f32 0.70710677, %v377_v20  ;;  %v674_v24 = vpop.f32.mrb[3].mxu0  ;;  %v382_v26 = vmul.f32 0.5, %v377_v20 }
 0x163   : > { %782 = verf.f32 %v383_v23 }
 0x16d   : > { %v783_v25 = vpop.eup %782 }
 0x16e   : > { %v385_v27 = vadd.f32 1.0, %v783_v25 }
 0x170   : > { %v386_v28 = vmul.f32 %v385_v27, %v382_v26 }
 0x172   : > { %v387_v29 = vpack.c.bf16 %v386_v28, %v386_v28 }
 0x174   : > { %692 = vmatmul.mubr.bf16.vlgmr.msra.gmra.mrb[0].mxu1 %v387_v29 }
 0x247   : > { %v493_v31 = vpop.f32.mrb[0].mxu1 }
 0x248   : > { %v494_v32 = vadd.f32 %v624_v30, %v493_v31  ;;  %v693_v33 = vpop.f32.mrb[1].mxu1 }
 0x249   : > { %v496_v34 = vpop.f32.mrb[2].mxu1 }
 0x24a   : > { %499 = vst [vmem:[%s268_s7] sm:$0xff] %v494_v32  ;;  %v694_v35 = vpop.f32.mrb[3].mxu1 }
 0x24b   : > { %883 = shalt.err (!%p880_p2)
}
 0x24c   : > { %s884_s12 = scalar_lea.hbm %s1175_s16, 128  ;;  %s888_s8 = scalar_lea.hbm %s1224_s5, 256 }
 0x24d   : > { %p885_p13 = scmp.ne.s32.totalorder %s1175_s16, %s884_s12  ;;  %p889_p4 = scmp.lt.u32.totalorder %s1175_s16, %s1224_s5 }
 0x24e   : > { %p890_p5 = scmp.lt.u32.totalorder %s888_s8, %s884_s12  ;;  %p892_p11 = scmp.lt.u32.totalorder %s884_s12, %s1175_s16 }
 0x24f   : > { %p886_p6 = pnand %p885_p13, %p1238_p0 }
 0x250   : > { %p891_p8 = por %p890_p5, %p889_p4 }
 0x251   : > { %p887_p10 = pneg %p886_p6 }
 0x252   : > { %p893_p1 = por %p892_p11, %p891_p8 }
 0x254   : > { %p894_p3 = pnand %p893_p1, %p887_p10 }
 0x256   : > { %897 = shalt.err (!%p894_p3)
}
 0x257   : > { %705 = dma.vmem_to_hbm [thread:$0]  (%p1238_p0), %s1177_s6, 128, %s1175_s16, %s501_s9  }
 0x258 PF: > { %s526_s28 = sand.u32 1, %s928_s18   ;;  %p1239_p7 = scmp.ne.s32.totalorder %s1229_s25, 0 }
 0x259   : > { %p1240_p9 = scmp.ge.s32.totalorder %s940_s21, 2  ;;  %s527_s7 = scalar_lea.sflag [#allocation4], %s526_s28 }
 0x25b   : > { %p719_p12 = pnand %p1240_p9, %p1239_p7 }
 0x25d   : > { %923 = dma.done.wait (!%p719_p12), %s527_s7, 128  }
 0x25e   : > { %925 = vsyncadd (!%p719_p12), %s527_s7, 4294967168  ;;  %p19_p2 = scmp.ge.s32.totalorder %s1090_s14, 4   ;;  %s1241_s18 = smov %s932_s19 }
 0x25f   : > { %s1242_s19 = smov %s936_s20  ;;  %s1243_s20 = smov %s1106_s27 }
 0x260   : > { %s1244_s21 = smov %s1090_s14  ;;  %21 = sbr.rel (!%p19_p2) target bundleno = 6 (0x6), region = 93 }
 0x267   :  { %532 = vsyncpa [#allocation3], 1 }
 0x268   :  { %534 = vsyncpa [#allocation3 + $0x1], 1 }
 0x269   :  { %535 = vsyncpa [#allocation6], 1 }
 0x26a   :  { %536 = vsyncpa [#allocation4], 1 }
 0x26b   :  { %538 = vsyncpa [#allocation4 + $0x1], 1 }

</bundles_post_ra>
